<compile_context>
chip_gen: v7x
topology: tpu7x:2x2x1
jax: 0.10.0
libtpu: 0.0.40
codegen_flags: <defaults>
</compile_context>

<pallas_src>
import functools

import jax
import jax.numpy as jnp
import numpy as np
from jax.experimental import pallas as pl
from jax.experimental.pallas import tpu as pltpu

LANE = 128     # lane width (last dim alignment for hidden layers)
SUBLANE = 8    # sublane width (batch tile alignment, f32)


def _round_up(x, m):
    return ((x + m - 1) // m) * m


def _cdiv(a, b):
    return -(-a // b)


# ---------------------------------------------------------------------------
# Kernels (fully fused forward pass; one batch tile per grid step)
# ---------------------------------------------------------------------------
def _qnet2_kernel(x_ref, w1_ref, b1_ref, wo_ref, bo_ref, o_ref):
    """CartPole branch: out = relu(x @ w1 + b1) @ wo + bo."""
    x = x_ref[...]
    h = jnp.dot(x, w1_ref[...], preferred_element_type=jnp.float32) + b1_ref[...]
    h = jnp.maximum(h, 0.0)                                   # relu (VPU)
    out = jnp.dot(h, wo_ref[...], preferred_element_type=jnp.float32) + bo_ref[...]
    o_ref[...] = out.astype(o_ref.dtype)


def _qnet4_kernel(x_ref, w1_ref, b1_ref, w2_ref, b2_ref, w3_ref, b3_ref,
                  wo_ref, bo_ref, o_ref):
    """Default branch: relu -> relu -> tanh -> linear, fused in-register."""
    x = x_ref[...]
    h = jnp.dot(x, w1_ref[...], preferred_element_type=jnp.float32) + b1_ref[...]
    h = jnp.maximum(h, 0.0)                                   # relu (VPU)
    h = jnp.dot(h, w2_ref[...], preferred_element_type=jnp.float32) + b2_ref[...]
    h = jnp.maximum(h, 0.0)                                   # relu (VPU)
    h = jnp.dot(h, w3_ref[...], preferred_element_type=jnp.float32) + b3_ref[...]
    h = jnp.tanh(h)                                           # tanh (EUP slot)
    out = jnp.dot(h, wo_ref[...], preferred_element_type=jnp.float32) + bo_ref[...]
    o_ref[...] = out.astype(o_ref.dtype)


# ---------------------------------------------------------------------------
# Hoisted weight preparation (run once per parameter update, NOT per forward)
# ---------------------------------------------------------------------------
def prepare_qnetwork_params(params, environment_name="CartPole-v0"):
    """Transpose nn.Linear weights to [in, out] and zero-pad hidden dims to a
    lane multiple. First layer keeps the true obs dim; last layer keeps the
    true action dim so both HBM input and output stay unpadded."""
    if environment_name == "CartPole-v0":
        layer_names = ["linear1", "output_layer"]
    else:
        layer_names = ["linear1", "linear2", "linear3", "output_layer"]

    prepped = []
    prev_dim = None
    for idx, name in enumerate(layer_names):
        w, b = params[name]                         # W: [out, in], b: [out]
        out_dim, in_dim = w.shape
        is_last = idx == len(layer_names) - 1
        in_eff = in_dim if idx == 0 else prev_dim
        out_eff = out_dim if is_last else _round_up(out_dim, LANE)
        w_t = jnp.asarray(w, jnp.float32).T          # -> [in, out] so y = x @ W
        w_p = jnp.pad(w_t, ((0, in_eff - in_dim), (0, out_eff - out_dim)))
        b_p = jnp.pad(jnp.asarray(b, jnp.float32), (0, out_eff - out_dim))
        prepped += [w_p, b_p.reshape(1, out_eff)]
        prev_dim = out_eff
    return tuple(prepped)


# ---------------------------------------------------------------------------
# Jitted forward
# ---------------------------------------------------------------------------
@functools.partial(jax.jit, static_argnames=("max_tile_m",))
def _qnetwork_forward_jit(x, prepped, max_tile_m=2048):
    x = jnp.asarray(x, jnp.float32)                  # matches X.float()
    B, D_in = x.shape
    A = prepped[-1].shape[-1]
    num_layers = len(prepped) // 2
    kernel = _qnet2_kernel if num_layers == 2 else _qnet4_kernel

    # --- batch tiling: no HBM padding; trailing partial tile is store-masked --
    n_tiles = _cdiv(B, max_tile_m)
    if n_tiles == 1 and B >= 1024:
        n_tiles = 2            # keep >=2 parallel steps so both v7x TCs get work
    if n_tiles == 1:
        TM = B                 # block == full batch dim: legal for any B
    else:
        TM = _round_up(_cdiv(B, n_tiles), SUBLANE)
        n_tiles = _cdiv(B, TM)

    in_specs = [pl.BlockSpec((TM, D_in), lambda i: (i, 0))]   # batch-tiled input
    for arr in prepped:
        # whole weight/bias as one block, constant index map -> VMEM-resident,
        # loaded once and reused for every batch tile.
        in_specs.append(pl.BlockSpec(arr.shape, lambda i: (0, 0)))

    return pl.pallas_call(
        kernel,
        out_shape=jax.ShapeDtypeStruct((B, A), jnp.float32),
        grid=(n_tiles,),
        in_specs=in_specs,
        out_specs=pl.BlockSpec((TM, A), lambda i: (i, 0)),
        compiler_params=pltpu.CompilerParams(
            dimension_semantics=("parallel",),
            vmem_limit_bytes=32 * 1024 * 1024,
        ),
    )(x, *prepped)


def qnetwork_forward(x, prepped_params, environment_name="CartPole-v0", *,
                     max_tile_m=2048):
    """Fused QNetwork forward. `prepped_params` comes from
    prepare_qnetwork_params (branch is encoded in its length)."""
    del environment_name
    return _qnetwork_forward_jit(x, prepped_params, max_tile_m=max_tile_m)


# ---------------------------------------------------------------------------
# Pure-JAX reference (mirrors the PyTorch forward exactly)
# ---------------------------------------------------------------------------
def qnetwork_reference(x, params, environment_name="CartPole-v0"):
    x = jnp.asarray(x, jnp.float32)
    if environment_name == "CartPole-v0":
        w1, b1 = params["linear1"]
        wo, bo = params["output_layer"]
        h = jax.nn.relu(x @ w1.T + b1)
        return h @ wo.T + bo
    w1, b1 = params["linear1"]
    w2, b2 = params["linear2"]
    w3, b3 = params["linear3"]
    wo, bo = params["output_layer"]
    h = jax.nn.relu(x @ w1.T + b1)
    h = jax.nn.relu(h @ w2.T + b2)
    h = jnp.tanh(h @ w3.T + b3)
    return h @ wo.T + bo


if __name__ == "__main__":
    key = jax.random.PRNGKey(0)
    k = jax.random.split(key, 9)

    def xavier(kk, out_dim, in_dim):
        std = (2.0 / (in_dim + out_dim)) ** 0.5
        return std * jax.random.normal(kk, (out_dim, in_dim), dtype=jnp.float32)

    B = 2

    # --- CartPole-v0 branch: 4 -> 32 -> 2 ---
    obs_cp, hid_cp, act_cp = 4, 32, 2
    params_cp = {
        "linear1": (xavier(k[0], hid_cp, obs_cp), jnp.zeros((hid_cp,), jnp.float32)),
        "output_layer": (xavier(k[1], act_cp, hid_cp), jnp.zeros((act_cp,), jnp.float32)),
    }
    prepped_cp = prepare_qnetwork_params(params_cp, "CartPole-v0")
    x_cp = jax.random.normal(k[2], (B, obs_cp), dtype=jnp.float32)
    out_cp = jax.block_until_ready(qnetwork_forward(x_cp, prepped_cp, "CartPole-v0"))
    ref_cp = qnetwork_reference(x_cp, params_cp, "CartPole-v0")

    # --- default branch (e.g. LunarLander): 8 -> 64 -> 64 -> 64 -> 4 ---
    obs_d, hid_d, act_d = 8, 64, 4
    params_d = {
        "linear1": (xavier(k[3], hid_d, obs_d), jnp.zeros((hid_d,), jnp.float32)),
        "linear2": (xavier(k[4], hid_d, hid_d), jnp.zeros((hid_d,), jnp.float32)),
        "linear3": (xavier(k[5], hid_d, hid_d), jnp.zeros((hid_d,), jnp.float32)),
        "output_layer": (xavier(k[6], act_d, hid_d), jnp.zeros((act_d,), jnp.float32)),
    }
    prepped_d = prepare_qnetwork_params(params_d, "LunarLander-v2")
    x_d = jax.random.normal(k[7], (B, obs_d), dtype=jnp.float32)
    out_d = jax.block_until_ready(qnetwork_forward(x_d, prepped_d, "LunarLander-v2"))
    ref_d = qnetwork_reference(x_d, params_d, "LunarLander-v2")

    # --- multi-tile path: non-divisible batch, partial trailing block masked ---
    x_big = jax.random.normal(k[8], (37, obs_d), dtype=jnp.float32)
    out_big = jax.block_until_ready(
        qnetwork_forward(x_big, prepped_d, "LunarLander-v2", max_tile_m=16))
    ref_big = qnetwork_reference(x_big, params_d, "LunarLander-v2")

    np.testing.assert_allclose(np.asarray(out_cp), np.asarray(ref_cp), rtol=1e-5, atol=1e-5)
    np.testing.assert_allclose(np.asarray(out_d), np.asarray(ref_d), rtol=1e-5, atol=1e-5)
    np.testing.assert_allclose(np.asarray(out_big), np.asarray(ref_big), rtol=1e-5, atol=1e-5)
    assert out_cp.shape == (B, act_cp) and out_d.shape == (B, act_d) and out_big.shape == (37, act_d)
    print("KERNEL_OK")
</pallas_src>

<mosaic_0001>
module attributes {stable_mosaic.version = 11 : i64} {
  func.func @_qnet2_kernel(%arg0: i32, %arg1: memref<2x4xf32, #tpu.memory_space<vmem>>, %arg2: memref<4x128xf32, #tpu.memory_space<vmem>>, %arg3: memref<1x128xf32, #tpu.memory_space<vmem>>, %arg4: memref<128x2xf32, #tpu.memory_space<vmem>>, %arg5: memref<1x2xf32, #tpu.memory_space<vmem>>, %arg6: memref<2x2xf32, #tpu.memory_space<vmem>>) attributes {dimension_semantics = [#tpu.dimension_semantics<parallel>], iteration_bounds = array<i64: 1>, scalar_prefetch = 0 : i64, scratch_operands = 0 : i64, tpu.core_type = #tpu.core_type<tc>, window_params = [{transform_indices = @transform_0, window_bounds = array<i64: 2, 4>}, {pipeline_mode = #tpu.pipeline_mode<synchronous>, transform_indices = @transform_1, window_bounds = array<i64: 4, 128>}, {pipeline_mode = #tpu.pipeline_mode<synchronous>, transform_indices = @transform_2, window_bounds = array<i64: 1, 128>}, {pipeline_mode = #tpu.pipeline_mode<synchronous>, transform_indices = @transform_3, window_bounds = array<i64: 128, 2>}, {pipeline_mode = #tpu.pipeline_mode<synchronous>, transform_indices = @transform_4, window_bounds = array<i64: 1, 2>}, {transform_indices = @transform_5, window_bounds = array<i64: 2, 2>}]} {
    %c0 = arith.constant 0 : index
    %c0_0 = arith.constant 0 : index
    %0 = vector.load %arg1[%c0, %c0_0] : memref<2x4xf32, #tpu.memory_space<vmem>>, vector<2x4xf32>
    %c0_1 = arith.constant 0 : index
    %c0_2 = arith.constant 0 : index
    %1 = vector.load %arg2[%c0_1, %c0_2] : memref<4x128xf32, #tpu.memory_space<vmem>>, vector<4x128xf32>
    %cst = arith.constant dense<0.000000e+00> : vector<2x128xf32>
    %2 = tpu.matmul %0, %1, %cst {dimension_numbers = #tpu.dot_dimension_numbers<[1], [0], [0], [1], [0, 0, 1, 1], [], []>} : vector<2x4xf32>, vector<4x128xf32>, vector<2x128xf32> -> vector<2x128xf32>
    %c0_3 = arith.constant 0 : index
    %c0_4 = arith.constant 0 : index
    %3 = vector.load %arg3[%c0_3, %c0_4] : memref<1x128xf32, #tpu.memory_space<vmem>>, vector<1x128xf32>
    %4 = vector.broadcast %3 : vector<1x128xf32> to vector<2x128xf32>
    %5 = arith.addf %2, %4 : vector<2x128xf32>
    %cst_5 = arith.constant 0.000000e+00 : f32
    %6 = vector.broadcast %cst_5 : f32 to vector<2x128xf32>
    %7 = arith.maximumf %5, %6 : vector<2x128xf32>
    %c0_6 = arith.constant 0 : index
    %c0_7 = arith.constant 0 : index
    %8 = vector.load %arg4[%c0_6, %c0_7] : memref<128x2xf32, #tpu.memory_space<vmem>>, vector<128x2xf32>
    %cst_8 = arith.constant dense<0.000000e+00> : vector<2x2xf32>
    %9 = tpu.matmul %7, %8, %cst_8 {dimension_numbers = #tpu.dot_dimension_numbers<[1], [0], [0], [1], [0, 0, 1, 1], [], []>} : vector<2x128xf32>, vector<128x2xf32>, vector<2x2xf32> -> vector<2x2xf32>
    %c0_9 = arith.constant 0 : index
    %c0_10 = arith.constant 0 : index
    %10 = vector.load %arg5[%c0_9, %c0_10] : memref<1x2xf32, #tpu.memory_space<vmem>>, vector<1x2xf32>
    %11 = vector.broadcast %10 : vector<1x2xf32> to vector<2x2xf32>
    %12 = arith.addf %9, %11 : vector<2x2xf32>
    %c0_11 = arith.constant 0 : index
    %c0_12 = arith.constant 0 : index
    %13 = vector.load %arg6[%c0_11, %c0_12] : memref<2x2xf32, #tpu.memory_space<vmem>>, vector<2x2xf32>
    tpu.vector_store %arg6[%c0_11, %c0_12], %12 {strides = array<i32>} : memref<2x2xf32, #tpu.memory_space<vmem>>, vector<2x2xf32>,
    return
  }
  func.func @transform_0(%arg0: i32) -> (i32, i32) {
    %c0_i32 = arith.constant 0 : i32
    %c0_i32_0 = arith.constant 0 : i32
    return %arg0, %c0_i32 : i32, i32
  }
  func.func @transform_1(%arg0: i32) -> (i32, i32) {
    %c0_i32 = arith.constant 0 : i32
    %c0_i32_0 = arith.constant 0 : i32
    %c0_i32_1 = arith.constant 0 : i32
    return %c0_i32, %c0_i32_0 : i32, i32
  }
  func.func @transform_2(%arg0: i32) -> (i32, i32) {
    %c0_i32 = arith.constant 0 : i32
    %c0_i32_0 = arith.constant 0 : i32
    %c0_i32_1 = arith.constant 0 : i32
    return %c0_i32, %c0_i32_0 : i32, i32
  }
  func.func @transform_3(%arg0: i32) -> (i32, i32) {
    %c0_i32 = arith.constant 0 : i32
    %c0_i32_0 = arith.constant 0 : i32
    %c0_i32_1 = arith.constant 0 : i32
    return %c0_i32, %c0_i32_0 : i32, i32
  }
  func.func @transform_4(%arg0: i32) -> (i32, i32) {
    %c0_i32 = arith.constant 0 : i32
    %c0_i32_0 = arith.constant 0 : i32
    %c0_i32_1 = arith.constant 0 : i32
    return %c0_i32, %c0_i32_0 : i32, i32
  }
  func.func @transform_5(%arg0: i32) -> (i32, i32) {
    %c0_i32 = arith.constant 0 : i32
    %c0_i32_0 = arith.constant 0 : i32
    return %arg0, %c0_i32 : i32, i32
  }
}

</mosaic_0001>

<bundles_post_ra>
// kernel: _qnetwork_forward_jit.1
= control target key start
LH: loop header
LB: loop body
LE: loop exit
PB: predicated region body
PF: predicated region fallthrough
CT: control target
= control target key end

     0   :  { %vm34_vm0 = vcmask 1043456   ;;  %vm30_vm1 = vcmask 31744   ;;  %v333_v1 = vmov 0.0   ;;  %vm334_vm2 = vmmov 0   ;;  %s439_s0 = inlined_call_operand.vmem [shape: f32[2,4], index: 0, kind: input, shape index: {}]   ;;  %s440_s1 = inlined_call_operand.vmem [shape: f32[4,128], index: 1, kind: input, shape index: {}]   ;;  %s441_s2 = inlined_call_operand.vmem [shape: f32[1,128], index: 2, kind: input, shape index: {}]   ;;  %s442_s3 = inlined_call_operand.vmem [shape: f32[128,2], index: 3, kind: input, shape index: {}]   ;;  %s443_s4 = inlined_call_operand.vmem [shape: f32[1,2], index: 4, kind: input, shape index: {}]   ;;  %s444_s5 = inlined_call_operand.hbm [shape: f32[2,2], index: 5, kind: output, shape index: {}]  }
   0x1   :  { %v22_v0 = vld [vmem:[%s440_s1] sm:$0xf]  ;;  %241 = vmatprep.subr.mxu0 %v333_v1  ;;  %243 = vmatprep.mubr.msk.f32.mxu0 %vm334_vm2, %v333_v1  ;;  %v110_v4 = vld [vmem:[%s442_s3 + $0x8] sm:$0xff]  ;;  %v335_v5 = vmov 0.0|0.0   ;;  %v111_v7 = vld [vmem:[%s442_s3 + $0x10] sm:$0xff] }
   0x2   :  { %v21_v2 = vld [vmem:[%s439_s0] sm:$0x3]  ;;  %242 = vmatpush3.msk.msra.mxu0 %vm34_vm0, %v22_v0  ;;  %281 = vmatprep.subr.bf16.mxu1 %v335_v5  ;;  %v112_v8 = vld [vmem:[%s442_s3 + $0x18] sm:$0xff]  ;;  %v114_v11 = vld [vmem:[%s442_s3 + $0x28] sm:$0xff] }
   0x3   :  { %v109_v3 = vld [vmem:[%s442_s3] sm:$0xff]  ;;  %244 = vmatmul.mubr.msk.f32.vlgmr.msra.gmra.mrb[0].mxu0 %vm30_vm1, %v21_v2  ;;  %278 = vmatprep.mubr.msk.f32.mxu1 %vm334_vm2, %v333_v1  ;;  %v285_v9 = vpack.c.bf16 %v112_v8, %v111_v7 }
   0x4   :  { %v282_v6 = vpack.c.bf16 %v110_v4, %v109_v3  ;;  %v113_v10 = vld [vmem:[%s442_s3 + $0x20] sm:$0xff] }
   0x6   :  { %283 = vmatpush3.bf16.msra.mxu1 %v282_v6 }
   0x7   :  { %284 = vmatprep.subr.bf16.mxu1 %v335_v5 }
   0x8   :  { %10 = vsyncpa [#allocation3], 0  ;;  %v288_v12 = vpack.c.bf16 %v114_v11, %v113_v10  ;;  %v115_v13 = vld [vmem:[%s442_s3 + $0x30] sm:$0xff]  ;;  %v116_v14 = vld [vmem:[%s442_s3 + $0x38] sm:$0xff]  ;;  %s336_s29 = smov [#allocation2]   ;;  %vm202_vm3 = vcmask 9216  }
   0x9   :  { %v291_v15 = vpack.c.bf16 %v116_v14, %v115_v13  ;;  %v117_v16 = vld [vmem:[%s442_s3 + $0x40] sm:$0xff]  ;;  %v118_v17 = vld [vmem:[%s442_s3 + $0x48] sm:$0xff]  ;;  %v119_v19 = vld [vmem:[%s442_s3 + $0x50] sm:$0xff]  ;;  %s210_s30 = sshll.u32 %s336_s29, 4  ;;  %s211_s30 = int_to_ptr.vmem [resolvable:$true] %s210_s30 }
   0xa   :  { %286 = vmatpush3.bf16.msra.mxu1 %v285_v9  ;;  %v294_v18 = vpack.c.bf16 %v118_v17, %v117_v16  ;;  %v120_v20 = vld [vmem:[%s442_s3 + $0x58] sm:$0xff]  ;;  %v121_v22 = vld [vmem:[%s442_s3 + $0x60] sm:$0xff]  ;;  %v122_v23 = vld [vmem:[%s442_s3 + $0x68] sm:$0xff]  ;;  %p314_p1 = scmp.lt.s32.totalorder %s211_s30, %s211_s30 }
   0xb   :  { %287 = vmatprep.subr.bf16.mxu1 %v335_v5  ;;  %v297_v21 = vpack.c.bf16 %v120_v20, %v119_v19  ;;  %v300_v24 = vpack.c.bf16 %v122_v23, %v121_v22  ;;  %v123_v25 = vld [vmem:[%s442_s3 + $0x70] sm:$0xff]  ;;  %v124_v26 = vld [vmem:[%s442_s3 + $0x78] sm:$0xff]  ;;  %v218_v28 = vld [vmem:[%s441_s2] ss:$0 sm:$0xff]  ;;  %s309_s3 = scalar_lea.vmem %s211_s30, 32 }
   0xc   :  { %v303_v27 = vpack.c.bf16 %v124_v26, %v123_v25  ;;  %v221_v33 = vld [vmem:[%s443_s4] ss:$0 sm:$0xff]  ;;  %p310_p0 = scmp.ne.s32.totalorder %s211_s30, %s309_s3  ;;  %p315_p2 = scmp.lt.s32.totalorder %s309_s3, %s309_s3 }
   0xe   :  { %289 = vmatpush3.bf16.msra.mxu1 %v288_v12  ;;  %p316_p3 = por %p315_p2, %p314_p1 }
   0xf   :  { %290 = vmatprep.subr.bf16.mxu1 %v335_v5 }
  0x10   :  { %p317_p4 = pnand %p316_p3, %p310_p0 }
  0x12   :  { %292 = vmatpush3.bf16.msra.mxu1 %v291_v15 }
  0x13   :  { %293 = vmatprep.subr.bf16.mxu1 %v335_v5 }
  0x16   :  { %295 = vmatpush3.bf16.msra.mxu1 %v294_v18 }
  0x17   :  { %296 = vmatprep.subr.bf16.mxu1 %v335_v5 }
  0x1a   :  { %298 = vmatpush3.bf16.msra.mxu1 %v297_v21 }
  0x1b   :  { %299 = vmatprep.subr.bf16.mxu1 %v335_v5 }
  0x1e   :  { %301 = vmatpush3.bf16.msra.mxu1 %v300_v24 }
  0x1f   :  { %302 = vmatprep.subr.bf16.mxu1 %v335_v5 }
  0x22   :  { %304 = vmatpush3.bf16.msra.mxu1 %v303_v27 }
  0xd6   :  { %v104_v29 = vpop.f32.mrb[0].mxu0 }
  0xd7   :  { %v105_v30 = vadd.f32 %v218_v28, %v104_v29  ;;  %v245_v31 = vpop.f32.mrb[1].mxu0 }
  0xd9   :  { %v108_v32 = vmax.f32 %v105_v30, 0.0 }
  0xdb   :  { %279 = vmatmul.mubr.f32.vlgmr.msra.gmra.mrb[0].mxu1 %v108_v32 }
 0x1ae   :  { %v198_v34 = vpop.f32.mrb[0].mxu1 }
 0x1af   :  { %v199_v35 = vadd.f32 %v221_v33, %v198_v34  ;;  %v280_v36 = vpop.f32.mrb[1].mxu1 }
 0x1b1   :  { %203 = vst.msk [vmem:[#allocation2] sm:$0x3] %vm202_vm3, %v199_v35 }
 0x1b2   :  { %320 = shalt.err (!%p317_p4)
}
 0x1b3   :  { %s321_s7 = scalar_lea.hbm %s444_s5, 32 }
 0x1b4   :  { %p322_p5 = scmp.ne.s32.totalorder %s444_s5, %s321_s7  ;;  %p325_p6 = scmp.lt.u32.totalorder %s321_s7, %s444_s5 }
 0x1b6   :  { %p327_p7 = pnand %p325_p6, %p322_p5 }
 0x1b8   :  { %330 = shalt.err (!%p327_p7)
}
 0x1b9   :  { %213 = dma.vmem_to_hbm [thread:$0]  %s211_s30, 32, %s444_s5, [#allocation3]  }
 0x1ba   :  { %331 = dma.done.wait [#allocation3], 32  }
 0x1bb   :  { %332 = vsyncadd [#allocation3], 4294967264 }
 0x1bc   :  { %217 = vsyncpa [#allocation3], 1 }

</bundles_post_ra>
